<compile_context>
chip_gen: v5e
topology: v5e:2x2
jax: 0.10.0
libtpu: 0.0.40
codegen_flags: <defaults>
</compile_context>

<pallas_src>
import functools

import jax
import jax.numpy as jnp
from jax.experimental import pallas as pl
from jax.experimental.pallas import tpu as pltpu

LANE = 128
SUBLANE = 8


def _round_up(x, m):
    return (x + m - 1) // m * m


def _fused_mlp_kernel(*refs, n_layers):
    """Fused MLP: o = sigmoid(W_L(...relu(W_1 x + b_1)...) + b_L).

    refs = (x_ref, w_0, b_0, w_1, b_1, ..., w_{L-1}, b_{L-1}, o_ref)
      x_ref: [TILE_M, D0] f32      w_i: [P_i, P_{i+1}] bf16
      b_i:   [1, P_{i+1}] f32      o_ref: [TILE_M, P_L] f32
    Intermediates never leave vregs/VMEM.
    """
    x_ref = refs[0]
    o_ref = refs[-1]
    wb = refs[1:-1]

    x = x_ref[...].astype(jnp.bfloat16)          # bf16 MXU operand
    for i in range(n_layers):
        w = wb[2 * i][...]                       # bf16 [P_i, P_{i+1}]
        b = wb[2 * i + 1][...]                   # f32  [1, P_{i+1}], broadcast over rows
        y = jnp.dot(x, w, preferred_element_type=jnp.float32) + b   # f32 accumulate
        if i < n_layers - 1:
            x = jnp.maximum(y, 0.0).astype(jnp.bfloat16)            # ReLU (VPU) -> next MXU pass
        else:
            # sigmoid(y) = 1 / (1 + exp(-y)): exp + approx reciprocal both on the EUP slot.
            e = jnp.exp(-y)
            x = pl.reciprocal(1.0 + e, approx=True)
    o_ref[...] = x.astype(o_ref.dtype)


def prepare_emulator_params(params, *, weight_dtype=jnp.bfloat16, bias_dtype=jnp.float32):
    """One-time (init-time) padding + casting of parameters.

    params: list of (w [D_i, D_{i+1}], b [D_{i+1}]).
    Returns a dict with lane-padded bf16 weights / f32 biases plus dim metadata.
    Layer-0's input dim is left unpadded so x never needs per-call padding.
    """
    n_layers = len(params)
    assert n_layers >= 1
    dims = [params[0][0].shape[0]] + [w.shape[1] for (w, _) in params]
    pdims = [dims[0]] + [_round_up(d, LANE) for d in dims[1:]]

    flat = []
    for i, (w, b) in enumerate(params):
        kin, kout = w.shape
        assert kin == dims[i] and kout == dims[i + 1]
        w_p = (jnp.zeros((pdims[i], pdims[i + 1]), weight_dtype)
               .at[:kin, :kout].set(w.astype(weight_dtype)))
        b_p = (jnp.zeros((1, pdims[i + 1]), bias_dtype)
               .at[0, :kout].set(b.astype(bias_dtype)))
        flat += [w_p, b_p]
    return {"flat": tuple(flat), "dims": tuple(dims), "pdims": tuple(pdims)}


def emulator_forward(x, prepped, *, tile_m_cap=512):
    """Single fused Pallas call for the whole Emulator forward pass.

    x: [M, D0] float32.  prepped: output of prepare_emulator_params (padded params).
    """
    flat = prepped["flat"]
    dims = prepped["dims"]
    pdims = prepped["pdims"]
    n_layers = len(dims) - 1

    M, K0 = x.shape
    assert K0 == dims[0], "x feature dim must match layer_sizes[0]"

    # Batch tile: >=2 grid steps for realistic batches (both v7x TensorCores busy),
    # multiple of 16 for bf16 sublane packing, never larger than the (rounded) batch.
    tile_m = min(tile_m_cap, _round_up(pl.cdiv(M, 2), 16))
    tile_m = max(SUBLANE, min(tile_m, _round_up(M, SUBLANE)))
    grid = (pl.cdiv(M, tile_m),)

    # Explicit VMEM budget: ~75% of physical (raises v5e's 16 MiB default scope,
    # leaves headroom inside v7x's 64 MiB).
    try:
        vmem_cap = pltpu.get_tpu_info().vmem_capacity_bytes
    except Exception:
        vmem_cap = 64 << 20
    vmem_limit = int(min(vmem_cap * 3 // 4, 112 << 20))

    # Advisory cost estimate for XLA's scheduler.
    flops = 2 * M * sum(pdims[i] * pdims[i + 1] for i in range(n_layers))
    transcendentals = M * pdims[-1]                      # final-layer sigmoid
    bytes_accessed = int(
        x.size * x.dtype.itemsize
        + sum(a.size * a.dtype.itemsize for a in flat)
        + M * pdims[-1] * 4
    )

    def build_call(single_buffer_weights):
        wb_kwargs = {}
        if single_buffer_weights:
            # Constant index_map -> weights never change across the grid; don't
            # double-buffer them (halves their VMEM footprint, key on v7x).
            wb_kwargs = dict(pipeline_mode=pl.Buffered(1))
        in_specs = [pl.BlockSpec((tile_m, dims[0]), lambda i: (i, 0))]
        for li in range(n_layers):
            in_specs.append(
                pl.BlockSpec((pdims[li], pdims[li + 1]), lambda i: (0, 0), **wb_kwargs))
            in_specs.append(
                pl.BlockSpec((1, pdims[li + 1]), lambda i: (0, 0), **wb_kwargs))
        out_spec = pl.BlockSpec((tile_m, pdims[-1]), lambda i: (i, 0))
        return pl.pallas_call(
            functools.partial(_fused_mlp_kernel, n_layers=n_layers),
            out_shape=jax.ShapeDtypeStruct((M, pdims[-1]), x.dtype),
            grid=grid,
            in_specs=in_specs,
            out_specs=out_spec,
            compiler_params=pltpu.CompilerParams(
                dimension_semantics=("parallel",),       # batch tiles split across TCs (v7x)
                vmem_limit_bytes=vmem_limit,
            ),
            cost_estimate=pl.CostEstimate(
                flops=flops,
                transcendentals=transcendentals,
                bytes_accessed=bytes_accessed,
            ),
        )

    try:
        out_p = build_call(True)(x, *flat)
    except Exception:
        # Fallback if this jax build rejects pl.Buffered(1): default double buffering.
        out_p = build_call(False)(x, *flat)

    if pdims[-1] != dims[-1]:
        out_p = out_p[:, : dims[-1]]                     # drop padded output lanes
    return out_p


def init_emulator_params(key, layer_sizes, dtype=jnp.float32):
    """Deterministic init mimicking nn.Linear default (uniform +/- 1/sqrt(fan_in))."""
    params = []
    for i in range(len(layer_sizes) - 1):
        fan_in, fan_out = layer_sizes[i], layer_sizes[i + 1]
        key, kw, kb = jax.random.split(key, 3)
        bound = 1.0 / jnp.sqrt(jnp.asarray(fan_in, dtype))
        w = jax.random.uniform(kw, (fan_in, fan_out), dtype, -bound, bound)
        b = jax.random.uniform(kb, (fan_out,), dtype, -bound, bound)
        params.append((w, b))
    return params


def emulator_forward_ref(x, params):
    """Pure-JAX f32 reference for correctness checking."""
    n_layers = len(params)
    for i, (w, b) in enumerate(params):
        y = x @ w + b
        if i < n_layers - 1:
            x = jnp.maximum(y, 0.0)
        else:
            x = jax.nn.sigmoid(y)
    return x


if __name__ == "__main__":
    key = jax.random.PRNGKey(0)
    layer_sizes = [32, 64, 48, 16]  # small MLP consistent with Emulator(layer_sizes)
    batch = 8

    kx, kp = jax.random.split(key)
    x = jax.random.normal(kx, (batch, layer_sizes[0]), jnp.float32)
    params = init_emulator_params(kp, layer_sizes)

    prepped = prepare_emulator_params(params)      # one-time pad + bf16 cast (init-time)
    out = emulator_forward(x, prepped)
    out = jax.block_until_ready(out)

    ref = emulator_forward_ref(x, params)
    assert out.shape == (batch, layer_sizes[-1])
    # bf16 MXU operands (f32 accumulate) + approx reciprocal -> loosened tolerance.
    assert jnp.allclose(out, ref, atol=2e-2, rtol=2e-2), "Pallas output mismatch vs reference"

    print("KERNEL_OK")
</pallas_src>

<mosaic_0001>
module attributes {stable_mosaic.version = 11 : i64} {
  func.func @_fused_mlp_kernel(%arg0: i32, %arg1: memref<8x32xf32, #tpu.memory_space<vmem>>, %arg2: memref<32x128xbf16, #tpu.memory_space<vmem>>, %arg3: memref<1x128xf32, #tpu.memory_space<vmem>>, %arg4: memref<128x128xbf16, #tpu.memory_space<vmem>>, %arg5: memref<1x128xf32, #tpu.memory_space<vmem>>, %arg6: memref<128x128xbf16, #tpu.memory_space<vmem>>, %arg7: memref<1x128xf32, #tpu.memory_space<vmem>>, %arg8: memref<8x128xf32, #tpu.memory_space<vmem>>) attributes {dimension_semantics = [#tpu.dimension_semantics<parallel>], iteration_bounds = array<i64: 1>, scalar_prefetch = 0 : i64, scratch_operands = 0 : i64, tpu.core_type = #tpu.core_type<tc>, window_params = [{transform_indices = @transform_0, window_bounds = array<i64: 8, 32>}, {pipeline_mode = #tpu.pipeline_mode<synchronous>, transform_indices = @transform_1, window_bounds = array<i64: 32, 128>}, {pipeline_mode = #tpu.pipeline_mode<synchronous>, transform_indices = @transform_2, window_bounds = array<i64: 1, 128>}, {pipeline_mode = #tpu.pipeline_mode<synchronous>, transform_indices = @transform_3, window_bounds = array<i64: 128, 128>}, {pipeline_mode = #tpu.pipeline_mode<synchronous>, transform_indices = @transform_4, window_bounds = array<i64: 1, 128>}, {pipeline_mode = #tpu.pipeline_mode<synchronous>, transform_indices = @transform_5, window_bounds = array<i64: 128, 128>}, {pipeline_mode = #tpu.pipeline_mode<synchronous>, transform_indices = @transform_6, window_bounds = array<i64: 1, 128>}, {transform_indices = @transform_7, window_bounds = array<i64: 8, 128>}]} {
    %c0 = arith.constant 0 : index
    %c0_0 = arith.constant 0 : index
    %0 = vector.load %arg1[%c0, %c0_0] : memref<8x32xf32, #tpu.memory_space<vmem>>, vector<8x32xf32>
    %1 = arith.truncf %0 : vector<8x32xf32> to vector<8x32xbf16>
    %c0_1 = arith.constant 0 : index
    %c0_2 = arith.constant 0 : index
    %2 = vector.load %arg2[%c0_1, %c0_2] : memref<32x128xbf16, #tpu.memory_space<vmem>>, vector<32x128xbf16>
    %c0_3 = arith.constant 0 : index
    %c0_4 = arith.constant 0 : index
    %3 = vector.load %arg3[%c0_3, %c0_4] : memref<1x128xf32, #tpu.memory_space<vmem>>, vector<1x128xf32>
    %cst = arith.constant dense<0.000000e+00> : vector<8x128xf32>
    %4 = tpu.matmul %1, %2, %cst {dimension_numbers = #tpu.dot_dimension_numbers<[1], [0], [0], [1], [0, 0, 1, 1], [], []>} : vector<8x32xbf16>, vector<32x128xbf16>, vector<8x128xf32> -> vector<8x128xf32>
    %5 = vector.broadcast %3 : vector<1x128xf32> to vector<8x128xf32>
    %6 = arith.addf %4, %5 : vector<8x128xf32>
    %cst_5 = arith.constant 0.000000e+00 : f32
    %7 = vector.broadcast %cst_5 : f32 to vector<8x128xf32>
    %8 = arith.maximumf %6, %7 : vector<8x128xf32>
    %9 = arith.truncf %8 : vector<8x128xf32> to vector<8x128xbf16>
    %c0_6 = arith.constant 0 : index
    %c0_7 = arith.constant 0 : index
    %10 = vector.load %arg4[%c0_6, %c0_7] : memref<128x128xbf16, #tpu.memory_space<vmem>>, vector<128x128xbf16>
    %c0_8 = arith.constant 0 : index
    %c0_9 = arith.constant 0 : index
    %11 = vector.load %arg5[%c0_8, %c0_9] : memref<1x128xf32, #tpu.memory_space<vmem>>, vector<1x128xf32>
    %cst_10 = arith.constant dense<0.000000e+00> : vector<8x128xf32>
    %12 = tpu.matmul %9, %10, %cst_10 {dimension_numbers = #tpu.dot_dimension_numbers<[1], [0], [0], [1], [0, 0, 1, 1], [], []>} : vector<8x128xbf16>, vector<128x128xbf16>, vector<8x128xf32> -> vector<8x128xf32>
    %13 = vector.broadcast %11 : vector<1x128xf32> to vector<8x128xf32>
    %14 = arith.addf %12, %13 : vector<8x128xf32>
    %cst_11 = arith.constant 0.000000e+00 : f32
    %15 = vector.broadcast %cst_11 : f32 to vector<8x128xf32>
    %16 = arith.maximumf %14, %15 : vector<8x128xf32>
    %17 = arith.truncf %16 : vector<8x128xf32> to vector<8x128xbf16>
    %c0_12 = arith.constant 0 : index
    %c0_13 = arith.constant 0 : index
    %18 = vector.load %arg6[%c0_12, %c0_13] : memref<128x128xbf16, #tpu.memory_space<vmem>>, vector<128x128xbf16>
    %c0_14 = arith.constant 0 : index
    %c0_15 = arith.constant 0 : index
    %19 = vector.load %arg7[%c0_14, %c0_15] : memref<1x128xf32, #tpu.memory_space<vmem>>, vector<1x128xf32>
    %cst_16 = arith.constant dense<0.000000e+00> : vector<8x128xf32>
    %20 = tpu.matmul %17, %18, %cst_16 {dimension_numbers = #tpu.dot_dimension_numbers<[1], [0], [0], [1], [0, 0, 1, 1], [], []>} : vector<8x128xbf16>, vector<128x128xbf16>, vector<8x128xf32> -> vector<8x128xf32>
    %21 = vector.broadcast %19 : vector<1x128xf32> to vector<8x128xf32>
    %22 = arith.addf %20, %21 : vector<8x128xf32>
    %cst_17 = arith.constant 0.000000e+00 : f32
    %23 = vector.broadcast %cst_17 : f32 to vector<8x128xf32>
    %24 = arith.subf %23, %22 : vector<8x128xf32>
    %25 = math.exp %24 : vector<8x128xf32>
    %cst_18 = arith.constant 1.000000e+00 : f32
    %26 = vector.broadcast %cst_18 : f32 to vector<8x128xf32>
    %27 = arith.addf %26, %25 : vector<8x128xf32>
    %28 = tpu.reciprocal %27 {approx = true} : vector<8x128xf32> -> vector<8x128xf32>
    %c0_19 = arith.constant 0 : index
    %c0_20 = arith.constant 0 : index
    %29 = vector.load %arg8[%c0_19, %c0_20] : memref<8x128xf32, #tpu.memory_space<vmem>>, vector<8x128xf32>
    tpu.vector_store %arg8[%c0_19, %c0_20], %28 {strides = array<i32>} : memref<8x128xf32, #tpu.memory_space<vmem>>, vector<8x128xf32>,
    return
  }
  func.func @transform_0(%arg0: i32) -> (i32, i32) {
    %c0_i32 = arith.constant 0 : i32
    %c0_i32_0 = arith.constant 0 : i32
    return %arg0, %c0_i32 : i32, i32
  }
  func.func @transform_1(%arg0: i32) -> (i32, i32) {
    %c0_i32 = arith.constant 0 : i32
    %c0_i32_0 = arith.constant 0 : i32
    %c0_i32_1 = arith.constant 0 : i32
    return %c0_i32, %c0_i32_0 : i32, i32
  }
  func.func @transform_2(%arg0: i32) -> (i32, i32) {
    %c0_i32 = arith.constant 0 : i32
    %c0_i32_0 = arith.constant 0 : i32
    %c0_i32_1 = arith.constant 0 : i32
    return %c0_i32, %c0_i32_0 : i32, i32
  }
  func.func @transform_3(%arg0: i32) -> (i32, i32) {
    %c0_i32 = arith.constant 0 : i32
    %c0_i32_0 = arith.constant 0 : i32
    %c0_i32_1 = arith.constant 0 : i32
    return %c0_i32, %c0_i32_0 : i32, i32
  }
  func.func @transform_4(%arg0: i32) -> (i32, i32) {
    %c0_i32 = arith.constant 0 : i32
    %c0_i32_0 = arith.constant 0 : i32
    %c0_i32_1 = arith.constant 0 : i32
    return %c0_i32, %c0_i32_0 : i32, i32
  }
  func.func @transform_5(%arg0: i32) -> (i32, i32) {
    %c0_i32 = arith.constant 0 : i32
    %c0_i32_0 = arith.constant 0 : i32
    %c0_i32_1 = arith.constant 0 : i32
    return %c0_i32, %c0_i32_0 : i32, i32
  }
  func.func @transform_6(%arg0: i32) -> (i32, i32) {
    %c0_i32 = arith.constant 0 : i32
    %c0_i32_0 = arith.constant 0 : i32
    %c0_i32_1 = arith.constant 0 : i32
    return %c0_i32, %c0_i32_0 : i32, i32
  }
  func.func @transform_7(%arg0: i32) -> (i32, i32) {
    %c0_i32 = arith.constant 0 : i32
    %c0_i32_0 = arith.constant 0 : i32
    return %arg0, %c0_i32 : i32, i32
  }
}

module attributes {stable_mosaic.version = 11 : i64} {
  func.func @_fused_mlp_kernel(%arg0: i32, %arg1: memref<8x32xf32, #tpu.memory_space<vmem>>, %arg2: memref<32x128xbf16, #tpu.memory_space<vmem>>, %arg3: memref<1x128xf32, #tpu.memory_space<vmem>>, %arg4: memref<128x128xbf16, #tpu.memory_space<vmem>>, %arg5: memref<1x128xf32, #tpu.memory_space<vmem>>, %arg6: memref<128x128xbf16, #tpu.memory_space<vmem>>, %arg7: memref<1x128xf32, #tpu.memory_space<vmem>>, %arg8: memref<8x128xf32, #tpu.memory_space<vmem>>) attributes {dimension_semantics = [#tpu.dimension_semantics<parallel>], iteration_bounds = array<i64: 1>, scalar_prefetch = 0 : i64, scratch_operands = 0 : i64, tpu.core_type = #tpu.core_type<tc>, window_params = [{transform_indices = @transform_0, window_bounds = array<i64: 8, 32>}, {pipeline_mode = #tpu.pipeline_mode<synchronous>, transform_indices = @transform_1, window_bounds = array<i64: 32, 128>}, {pipeline_mode = #tpu.pipeline_mode<synchronous>, transform_indices = @transform_2, window_bounds = array<i64: 1, 128>}, {pipeline_mode = #tpu.pipeline_mode<synchronous>, transform_indices = @transform_3, window_bounds = array<i64: 128, 128>}, {pipeline_mode = #tpu.pipeline_mode<synchronous>, transform_indices = @transform_4, window_bounds = array<i64: 1, 128>}, {pipeline_mode = #tpu.pipeline_mode<synchronous>, transform_indices = @transform_5, window_bounds = array<i64: 128, 128>}, {pipeline_mode = #tpu.pipeline_mode<synchronous>, transform_indices = @transform_6, window_bounds = array<i64: 1, 128>}, {transform_indices = @transform_7, window_bounds = array<i64: 8, 128>}]} {
    %c0 = arith.constant 0 : index
    %c0_0 = arith.constant 0 : index
    %0 = vector.load %arg1[%c0, %c0_0] : memref<8x32xf32, #tpu.memory_space<vmem>>, vector<8x32xf32>
    %1 = arith.truncf %0 : vector<8x32xf32> to vector<8x32xbf16>
    %c0_1 = arith.constant 0 : index
    %c0_2 = arith.constant 0 : index
    %2 = vector.load %arg2[%c0_1, %c0_2] : memref<32x128xbf16, #tpu.memory_space<vmem>>, vector<32x128xbf16>
    %c0_3 = arith.constant 0 : index
    %c0_4 = arith.constant 0 : index
    %3 = vector.load %arg3[%c0_3, %c0_4] : memref<1x128xf32, #tpu.memory_space<vmem>>, vector<1x128xf32>
    %cst = arith.constant dense<0.000000e+00> : vector<8x128xf32>
    %4 = tpu.matmul %1, %2, %cst {dimension_numbers = #tpu.dot_dimension_numbers<[1], [0], [0], [1], [0, 0, 1, 1], [], []>} : vector<8x32xbf16>, vector<32x128xbf16>, vector<8x128xf32> -> vector<8x128xf32>
    %5 = vector.broadcast %3 : vector<1x128xf32> to vector<8x128xf32>
    %6 = arith.addf %4, %5 : vector<8x128xf32>
    %cst_5 = arith.constant 0.000000e+00 : f32
    %7 = vector.broadcast %cst_5 : f32 to vector<8x128xf32>
    %8 = arith.maximumf %6, %7 : vector<8x128xf32>
    %9 = arith.truncf %8 : vector<8x128xf32> to vector<8x128xbf16>
    %c0_6 = arith.constant 0 : index
    %c0_7 = arith.constant 0 : index
    %10 = vector.load %arg4[%c0_6, %c0_7] : memref<128x128xbf16, #tpu.memory_space<vmem>>, vector<128x128xbf16>
    %c0_8 = arith.constant 0 : index
    %c0_9 = arith.constant 0 : index
    %11 = vector.load %arg5[%c0_8, %c0_9] : memref<1x128xf32, #tpu.memory_space<vmem>>, vector<1x128xf32>
    %cst_10 = arith.constant dense<0.000000e+00> : vector<8x128xf32>
    %12 = tpu.matmul %9, %10, %cst_10 {dimension_numbers = #tpu.dot_dimension_numbers<[1], [0], [0], [1], [0, 0, 1, 1], [], []>} : vector<8x128xbf16>, vector<128x128xbf16>, vector<8x128xf32> -> vector<8x128xf32>
    %13 = vector.broadcast %11 : vector<1x128xf32> to vector<8x128xf32>
    %14 = arith.addf %12, %13 : vector<8x128xf32>
    %cst_11 = arith.constant 0.000000e+00 : f32
    %15 = vector.broadcast %cst_11 : f32 to vector<8x128xf32>
    %16 = arith.maximumf %14, %15 : vector<8x128xf32>
    %17 = arith.truncf %16 : vector<8x128xf32> to vector<8x128xbf16>
    %c0_12 = arith.constant 0 : index
    %c0_13 = arith.constant 0 : index
    %18 = vector.load %arg6[%c0_12, %c0_13] : memref<128x128xbf16, #tpu.memory_space<vmem>>, vector<128x128xbf16>
    %c0_14 = arith.constant 0 : index
    %c0_15 = arith.constant 0 : index
    %19 = vector.load %arg7[%c0_14, %c0_15] : memref<1x128xf32, #tpu.memory_space<vmem>>, vector<1x128xf32>
    %cst_16 = arith.constant dense<0.000000e+00> : vector<8x128xf32>
    %20 = tpu.matmul %17, %18, %cst_16 {dimension_numbers = #tpu.dot_dimension_numbers<[1], [0], [0], [1], [0, 0, 1, 1], [], []>} : vector<8x128xbf16>, vector<128x128xbf16>, vector<8x128xf32> -> vector<8x128xf32>
    %21 = vector.broadcast %19 : vector<1x128xf32> to vector<8x128xf32>
    %22 = arith.addf %20, %21 : vector<8x128xf32>
    %cst_17 = arith.constant 0.000000e+00 : f32
    %23 = vector.broadcast %cst_17 : f32 to vector<8x128xf32>
    %24 = arith.subf %23, %22 : vector<8x128xf32>
    %25 = math.exp %24 : vector<8x128xf32>
    %cst_18 = arith.constant 1.000000e+00 : f32
    %26 = vector.broadcast %cst_18 : f32 to vector<8x128xf32>
    %27 = arith.addf %26, %25 : vector<8x128xf32>
    %28 = tpu.reciprocal %27 {approx = true} : vector<8x128xf32> -> vector<8x128xf32>
    %c0_19 = arith.constant 0 : index
    %c0_20 = arith.constant 0 : index
    %29 = vector.load %arg8[%c0_19, %c0_20] : memref<8x128xf32, #tpu.memory_space<vmem>>, vector<8x128xf32>
    tpu.vector_store %arg8[%c0_19, %c0_20], %28 {strides = array<i32>} : memref<8x128xf32, #tpu.memory_space<vmem>>, vector<8x128xf32>,
    return
  }
  func.func @transform_0(%arg0: i32) -> (i32, i32) {
    %c0_i32 = arith.constant 0 : i32
    %c0_i32_0 = arith.constant 0 : i32
    return %arg0, %c0_i32 : i32, i32
  }
  func.func @transform_1(%arg0: i32) -> (i32, i32) {
    %c0_i32 = arith.constant 0 : i32
    %c0_i32_0 = arith.constant 0 : i32
    %c0_i32_1 = arith.constant 0 : i32
    return %c0_i32, %c0_i32_0 : i32, i32
  }
  func.func @transform_2(%arg0: i32) -> (i32, i32) {
    %c0_i32 = arith.constant 0 : i32
    %c0_i32_0 = arith.constant 0 : i32
    %c0_i32_1 = arith.constant 0 : i32
    return %c0_i32, %c0_i32_0 : i32, i32
  }
  func.func @transform_3(%arg0: i32) -> (i32, i32) {
    %c0_i32 = arith.constant 0 : i32
    %c0_i32_0 = arith.constant 0 : i32
    %c0_i32_1 = arith.constant 0 : i32
    return %c0_i32, %c0_i32_0 : i32, i32
  }
  func.func @transform_4(%arg0: i32) -> (i32, i32) {
    %c0_i32 = arith.constant 0 : i32
    %c0_i32_0 = arith.constant 0 : i32
    %c0_i32_1 = arith.constant 0 : i32
    return %c0_i32, %c0_i32_0 : i32, i32
  }
  func.func @transform_5(%arg0: i32) -> (i32, i32) {
    %c0_i32 = arith.constant 0 : i32
    %c0_i32_0 = arith.constant 0 : i32
    %c0_i32_1 = arith.constant 0 : i32
    return %c0_i32, %c0_i32_0 : i32, i32
  }
  func.func @transform_6(%arg0: i32) -> (i32, i32) {
    %c0_i32 = arith.constant 0 : i32
    %c0_i32_0 = arith.constant 0 : i32
    %c0_i32_1 = arith.constant 0 : i32
    return %c0_i32, %c0_i32_0 : i32, i32
  }
  func.func @transform_7(%arg0: i32) -> (i32, i32) {
    %c0_i32 = arith.constant 0 : i32
    %c0_i32_0 = arith.constant 0 : i32
    return %arg0, %c0_i32 : i32, i32
  }
}

</mosaic_0001>

<bundles_post_ra>
// kernel: tpu_custom_call.1
= control target key start
LH: loop header
LB: loop body
LE: loop exit
PB: predicated region body
PF: predicated region fallthrough
CT: control target
= control target key end

     0   :  { %12 = vsyncpa [#allocation3], 0  ;;  %s623_s0 = inlined_call_operand.hbm [shape: f32[8,32], index: 0, kind: input, shape index: {}]   ;;  %s624_s1 = inlined_call_operand.hbm [shape: bf16[32,128], index: 1, kind: input, shape index: {}]   ;;  %s625_s2 = inlined_call_operand.vmem [shape: f32[1,128], index: 2, kind: input, shape index: {}]   ;;  %s626_s3 = inlined_call_operand.hbm [shape: bf16[128,128], index: 3, kind: input, shape index: {}]   ;;  %s627_s4 = inlined_call_operand.vmem [shape: f32[1,128], index: 4, kind: input, shape index: {}]   ;;  %s628_s5 = inlined_call_operand.hbm [shape: bf16[128,128], index: 5, kind: input, shape index: {}]   ;;  %s629_s6 = inlined_call_operand.vmem [shape: f32[1,128], index: 6, kind: input, shape index: {}]   ;;  %s630_s7 = inlined_call_operand.hbm [shape: f32[8,128], index: 7, kind: output, shape index: {}]  }
   0x1   :  { %13 = vsyncpa [#allocation6], 0 }
   0x2   :  { %14 = vsyncpa [#allocation9], 0  ;;  %s31_s26 = sshll.u32 %s624_s1, 4  ;;  %s32_s26 = int_to_ptr.hbm [resolvable:$true] %s31_s26 }
   0x3   :  { %15 = vsyncpa [#allocation4], 0  ;;  %s552_s27 = smov [#allocation5]   ;;  %s21_s8 = sshll.u32 %s623_s0, 4  ;;  %s22_s8 = int_to_ptr.hbm [resolvable:$true] %s21_s8 }
   0x4   :  { %s33_s28 = sshll.u32 %s552_s27, 4  ;;  %s553_s9 = smov 64   ;;  %s34_s28 = int_to_ptr.vmem [resolvable:$true] %s33_s28 }
   0x5   :  { %s554_s10 = smov 4   ;;  %s555_s11 = smov [#allocation2]  }
   0x6   :  { %39 = dma.hbm_to_vmem [thread:$0]  %s32_s26, 256, %s34_s28, [#allocation6], %s553_s9, %s553_s9, %s554_s10  }
   0x7   :  { %s23_s12 = sshll.u32 %s555_s11, 4  ;;  %s46_s15 = sshll.u32 %s626_s3, 4  ;;  %s24_s12 = int_to_ptr.vmem [resolvable:$true] %s23_s12  ;;  %s47_s15 = int_to_ptr.hbm [resolvable:$true] %s46_s15 }
   0x8   :  { %26 = dma.hbm_to_vmem [thread:$0]  %s22_s8, 128, %s24_s12, [#allocation3]  }
   0x9   :  { %s61_s17 = sshll.u32 %s628_s5, 4  ;;  %s556_s18 = smov [#allocation7]   ;;  %s62_s17 = int_to_ptr.hbm [resolvable:$true] %s61_s17 }
   0xa   :  { %s48_s19 = sshll.u32 %s556_s18, 4  ;;  %s557_s0 = smov [#allocation8]   ;;  %s49_s19 = int_to_ptr.vmem [resolvable:$true] %s48_s19 }
   0xb   :  { %54 = dma.hbm_to_vmem [thread:$0]  %s47_s15, 1024, %s49_s19, [#allocation6], %s553_s9, %s553_s9, %s554_s10  }
   0xc   :  { %s63_s20 = sshll.u32 %s557_s0, 4  ;;  %s64_s20 = int_to_ptr.vmem [resolvable:$true] %s63_s20 }
   0xd   :  { %69 = dma.hbm_to_vmem [thread:$0]  %s62_s17, 1024, %s64_s20, [#allocation9], %s553_s9, %s553_s9, %s554_s10  }
   0xe   :  { %544 = dma.done.wait [#allocation3], 128  }
   0xf   :  { %545 = vsyncadd [#allocation3], 4294967168 }
  0x10   :  { %546 = dma.done.wait [#allocation6], 1280  }
  0x11   :  { %547 = vsyncadd [#allocation6], 4294966016 }
  0x12   :  { %548 = dma.done.wait [#allocation9], 1024  }
  0x13   :  { %549 = vsyncadd [#allocation9], 4294966272  ;;  %v393_v0 = vld [vmem:[#allocation5 + $0x8] sm:$0xff]  ;;  %v392_v2 = vld [vmem:[#allocation5] sm:$0xff]  ;;  %vm111_vm0 = vcmask 261120   ;;  %s307_s27 = sshll.u32 %s630_s7, 4  ;;  %s308_s27 = int_to_ptr.hbm [resolvable:$true] %s307_s27 }
  0x14   :  { %v401_v1 = vld [vmem:[#allocation7 + $0x38] sm:$0xff]  ;;  %121 = vmatpush.bf16.msra.mxu0 %v393_v0  ;;  %v89_v3 = vld [vmem:[#allocation2] sm:$0xff]  ;;  %v400_v4 = vld [vmem:[#allocation7 + $0x30] sm:$0xff] }
  0x15   :  { %198 = vmatpush.bf16.msra.mxu1 %v401_v1  ;;  %v90_v5 = vpack.c.bf16 %v89_v3, %v89_v3  ;;  %v399_v6 = vld [vmem:[#allocation7 + $0x28] sm:$0xff]  ;;  %v398_v7 = vld [vmem:[#allocation7 + $0x20] sm:$0xff]  ;;  %v397_v8 = vld [vmem:[#allocation7 + $0x18] sm:$0xff] }
  0x16   :  { %v396_v9 = vld [vmem:[#allocation7 + $0x10] sm:$0xff]  ;;  %v395_v10 = vld [vmem:[#allocation7 + $0x8] sm:$0xff]  ;;  %v394_v11 = vld [vmem:[#allocation7] sm:$0xff] }
  0x17   :  { %v409_v12 = vld [vmem:[#allocation8 + $0x38] sm:$0xff]  ;;  %v408_v13 = vld [vmem:[#allocation8 + $0x30] sm:$0xff]  ;;  %v407_v14 = vld [vmem:[#allocation8 + $0x28] sm:$0xff] }
  0x18   :  { %122 = vmatpush.bf16.msra.mxu0 %v392_v2  ;;  %281 = vmatpush.bf16.msra.mxu2 %v409_v12  ;;  %v406_v15 = vld [vmem:[#allocation8 + $0x20] sm:$0xff]  ;;  %v405_v16 = vld [vmem:[#allocation8 + $0x18] sm:$0xff]  ;;  %v404_v17 = vld [vmem:[#allocation8 + $0x10] sm:$0xff] }
  0x19   :  { %199 = vmatpush.bf16.msra.mxu1 %v400_v4  ;;  %v417_v18 = vld [vmem:[%s625_s2] ss:$0 sm:$0xff]  ;;  %v402_v25 = vld [vmem:[#allocation8] sm:$0xff] }
  0x1a   :  { %v403_v24 = vld [vmem:[#allocation8 + $0x8] sm:$0xff] }
  0x1b   :  { %327 = vmatmul.msk.bf16.vlgmr.msra.gmra.mxu0 %vm111_vm0, %v90_v5  ;;  %v418_v26 = vld [vmem:[%s627_s4] ss:$0 sm:$0xff]  ;;  %s558_s4 = smov [#allocation10]  }
  0x1c   :  { %282 = vmatpush.bf16.msra.mxu2 %v408_v13  ;;  %v419_v32 = vld [vmem:[%s629_s6] ss:$0 sm:$0xff]  ;;  %s305_s24 = sshll.u32 %s558_s4, 4  ;;  %s306_s24 = int_to_ptr.vmem [resolvable:$true] %s305_s24 }
  0x1d   :  { %200 = vmatpush.bf16.msra.mxu1 %v399_v6 }
  0x20   :  { %283 = vmatpush.bf16.msra.mxu2 %v407_v14 }
  0x21   :  { %201 = vmatpush.bf16.msra.mxu1 %v398_v7 }
  0x24   :  { %284 = vmatpush.bf16.msra.mxu2 %v406_v15 }
  0x25   :  { %202 = vmatpush.bf16.msra.mxu1 %v397_v8 }
  0x28   :  { %285 = vmatpush.bf16.msra.mxu2 %v405_v16 }
  0x29   :  { %203 = vmatpush.bf16.msra.mxu1 %v396_v9 }
  0x2c   :  { %286 = vmatpush.bf16.msra.mxu2 %v404_v17 }
  0x2d   :  { %204 = vmatpush.bf16.msra.mxu1 %v395_v10 }
  0x30   :  { %287 = vmatpush.bf16.msra.mxu2 %v403_v24 }
  0x31   :  { %205 = vmatpush.bf16.msra.mxu1 %v394_v11 }
  0x34   :  { %288 = vmatpush.bf16.msra.mxu2 %v402_v25 }
  0x98   :  { %v124_v19 = vpop.f32.mrf.mxu0 }
  0x99   :  { %v125_v20 = vadd.f32 %v417_v18, %v124_v19 }
  0x9b   :  { %v128_v21 = vmax.f32 %v125_v20, 0.0 }
  0x9d   :  { %v129_v22 = vpack.c.bf16 %v128_v21, %v128_v21 }
  0x9f   :  { %206 = vmatmul.bf16.vlgmr.msra.gmra.mxu1 %v129_v22 }
  0xa0   :  { %v126_v23 = vpop.f32.mrf.mxu0 }
 0x11c   :  { %v207_v27 = vpop.f32.mrf.mxu1 }
 0x11d   :  { %v208_v28 = vadd.f32 %v418_v26, %v207_v27 }
 0x11f   :  { %v211_v29 = vmax.f32 %v208_v28, 0.0 }
 0x121   :  { %v212_v30 = vpack.c.bf16 %v211_v29, %v211_v29 }
 0x123   :  { %289 = vmatmul.bf16.vlgmr.msra.gmra.mxu2 %v212_v30 }
 0x124   :  { %v209_v31 = vpop.f32.mrf.mxu1 }
 0x1a6   :  { %v290_v33 = vpop.f32.mrf.mxu2 }
 0x1a7   :  { %v291_v34 = vadd.f32 %v419_v32, %v290_v33 }
 0x1a9   :  { %v294_v35 = vsub.f32 0.0, %v291_v34 }
 0x1ab   :  { %v295_v36 = vmul.f32 1.442695, %v294_v35 }
 0x1ad   :  { %420 = vpow2.f32 %v295_v36 }
 0x1ae   :  { %v292_v37 = vpop.f32.mrf.mxu2 }
 0x1b3   :  { %v421_v38 = vpop.eup %420 }
 0x1b4   :  { %v297_v39 = vadd.f32 1.0, %v421_v38 }
 0x1b6   :  { %422 = vrcp.f32 %v297_v39 }
 0x1bc   :  { %v423_v40 = vpop.eup %422 }
 0x1bd   :  { %299 = vst [vmem:[#allocation10] sm:$0xff] %v423_v40 }
 0x1be   :  { %310 = dma.vmem_to_hbm [thread:$0]  %s306_s24, 128, %s308_s27, [#allocation4]  }
 0x1bf   :  { %550 = dma.done.wait [#allocation4], 128  }
 0x1c0   :  { %551 = vsyncadd [#allocation4], 4294967168 }
 0x1c1   :  { %315 = vsyncpa [#allocation3], 1 }
 0x1c2   :  { %316 = vsyncpa [#allocation6], 1 }
 0x1c3   :  { %317 = vsyncpa [#allocation9], 1 }
 0x1c4   :  { %318 = vsyncpa [#allocation4], 1 }

// kernel: tpu_custom_call.1
= control target key start
LH: loop header
LB: loop body
LE: loop exit
PB: predicated region body
PF: predicated region fallthrough
CT: control target
= control target key end

     0   :  { %12 = vsyncpa [#allocation3], 0  ;;  %s623_s0 = inlined_call_operand.hbm [shape: f32[8,32], index: 0, kind: input, shape index: {}]   ;;  %s624_s1 = inlined_call_operand.hbm [shape: bf16[32,128], index: 1, kind: input, shape index: {}]   ;;  %s625_s2 = inlined_call_operand.vmem [shape: f32[1,128], index: 2, kind: input, shape index: {}]   ;;  %s626_s3 = inlined_call_operand.hbm [shape: bf16[128,128], index: 3, kind: input, shape index: {}]   ;;  %s627_s4 = inlined_call_operand.vmem [shape: f32[1,128], index: 4, kind: input, shape index: {}]   ;;  %s628_s5 = inlined_call_operand.hbm [shape: bf16[128,128], index: 5, kind: input, shape index: {}]   ;;  %s629_s6 = inlined_call_operand.vmem [shape: f32[1,128], index: 6, kind: input, shape index: {}]   ;;  %s630_s7 = inlined_call_operand.hbm [shape: f32[8,128], index: 7, kind: output, shape index: {}]  }
   0x1   :  { %13 = vsyncpa [#allocation6], 0 }
   0x2   :  { %14 = vsyncpa [#allocation9], 0  ;;  %s31_s26 = sshll.u32 %s624_s1, 4  ;;  %s32_s26 = int_to_ptr.hbm [resolvable:$true] %s31_s26 }
   0x3   :  { %15 = vsyncpa [#allocation4], 0  ;;  %s552_s27 = smov [#allocation5]   ;;  %s21_s8 = sshll.u32 %s623_s0, 4  ;;  %s22_s8 = int_to_ptr.hbm [resolvable:$true] %s21_s8 }
   0x4   :  { %s33_s28 = sshll.u32 %s552_s27, 4  ;;  %s553_s9 = smov 64   ;;  %s34_s28 = int_to_ptr.vmem [resolvable:$true] %s33_s28 }
   0x5   :  { %s554_s10 = smov 4   ;;  %s555_s11 = smov [#allocation2]  }
   0x6   :  { %39 = dma.hbm_to_vmem [thread:$0]  %s32_s26, 256, %s34_s28, [#allocation6], %s553_s9, %s553_s9, %s554_s10  }
   0x7   :  { %s23_s12 = sshll.u32 %s555_s11, 4  ;;  %s46_s15 = sshll.u32 %s626_s3, 4  ;;  %s24_s12 = int_to_ptr.vmem [resolvable:$true] %s23_s12  ;;  %s47_s15 = int_to_ptr.hbm [resolvable:$true] %s46_s15 }
   0x8   :  { %26 = dma.hbm_to_vmem [thread:$0]  %s22_s8, 128, %s24_s12, [#allocation3]  }
   0x9   :  { %s61_s17 = sshll.u32 %s628_s5, 4  ;;  %s556_s18 = smov [#allocation7]   ;;  %s62_s17 = int_to_ptr.hbm [resolvable:$true] %s61_s17 }
   0xa   :  { %s48_s19 = sshll.u32 %s556_s18, 4  ;;  %s557_s0 = smov [#allocation8]   ;;  %s49_s19 = int_to_ptr.vmem [resolvable:$true] %s48_s19 }
   0xb   :  { %54 = dma.hbm_to_vmem [thread:$0]  %s47_s15, 1024, %s49_s19, [#allocation6], %s553_s9, %s553_s9, %s554_s10  }
   0xc   :  { %s63_s20 = sshll.u32 %s557_s0, 4  ;;  %s64_s20 = int_to_ptr.vmem [resolvable:$true] %s63_s20 }
   0xd   :  { %69 = dma.hbm_to_vmem [thread:$0]  %s62_s17, 1024, %s64_s20, [#allocation9], %s553_s9, %s553_s9, %s554_s10  }
   0xe   :  { %544 = dma.done.wait [#allocation3], 128  }
   0xf   :  { %545 = vsyncadd [#allocation3], 4294967168 }
  0x10   :  { %546 = dma.done.wait [#allocation6], 1280  }
  0x11   :  { %547 = vsyncadd [#allocation6], 4294966016 }
  0x12   :  { %548 = dma.done.wait [#allocation9], 1024  }
  0x13   :  { %549 = vsyncadd [#allocation9], 4294966272  ;;  %v393_v0 = vld [vmem:[#allocation5 + $0x8] sm:$0xff]  ;;  %v392_v2 = vld [vmem:[#allocation5] sm:$0xff]  ;;  %vm111_vm0 = vcmask 261120   ;;  %s307_s27 = sshll.u32 %s630_s7, 4  ;;  %s308_s27 = int_to_ptr.hbm [resolvable:$true] %s307_s27 }
  0x14   :  { %v401_v1 = vld [vmem:[#allocation7 + $0x38] sm:$0xff]  ;;  %121 = vmatpush.bf16.msra.mxu0 %v393_v0  ;;  %v89_v3 = vld [vmem:[#allocation2] sm:$0xff]  ;;  %v400_v4 = vld [vmem:[#allocation7 + $0x30] sm:$0xff] }
  0x15   :  { %198 = vmatpush.bf16.msra.mxu1 %v401_v1  ;;  %v90_v5 = vpack.c.bf16 %v89_v3, %v89_v3  ;;  %v399_v6 = vld [vmem:[#allocation7 + $0x28] sm:$0xff]  ;;  %v398_v7 = vld [vmem:[#allocation7 + $0x20] sm:$0xff]  ;;  %v397_v8 = vld [vmem:[#allocation7 + $0x18] sm:$0xff] }
  0x16   :  { %v396_v9 = vld [vmem:[#allocation7 + $0x10] sm:$0xff]  ;;  %v395_v10 = vld [vmem:[#allocation7 + $0x8] sm:$0xff]  ;;  %v394_v11 = vld [vmem:[#allocation7] sm:$0xff] }
  0x17   :  { %v409_v12 = vld [vmem:[#allocation8 + $0x38] sm:$0xff]  ;;  %v408_v13 = vld [vmem:[#allocation8 + $0x30] sm:$0xff]  ;;  %v407_v14 = vld [vmem:[#allocation8 + $0x28] sm:$0xff] }
  0x18   :  { %122 = vmatpush.bf16.msra.mxu0 %v392_v2  ;;  %281 = vmatpush.bf16.msra.mxu2 %v409_v12  ;;  %v406_v15 = vld [vmem:[#allocation8 + $0x20] sm:$0xff]  ;;  %v405_v16 = vld [vmem:[#allocation8 + $0x18] sm:$0xff]  ;;  %v404_v17 = vld [vmem:[#allocation8 + $0x10] sm:$0xff] }
  0x19   :  { %199 = vmatpush.bf16.msra.mxu1 %v400_v4  ;;  %v417_v18 = vld [vmem:[%s625_s2] ss:$0 sm:$0xff]  ;;  %v402_v25 = vld [vmem:[#allocation8] sm:$0xff] }
  0x1a   :  { %v403_v24 = vld [vmem:[#allocation8 + $0x8] sm:$0xff] }
  0x1b   :  { %327 = vmatmul.msk.bf16.vlgmr.msra.gmra.mxu0 %vm111_vm0, %v90_v5  ;;  %v418_v26 = vld [vmem:[%s627_s4] ss:$0 sm:$0xff]  ;;  %s558_s4 = smov [#allocation10]  }
  0x1c   :  { %282 = vmatpush.bf16.msra.mxu2 %v408_v13  ;;  %v419_v32 = vld [vmem:[%s629_s6] ss:$0 sm:$0xff]  ;;  %s305_s24 = sshll.u32 %s558_s4, 4  ;;  %s306_s24 = int_to_ptr.vmem [resolvable:$true] %s305_s24 }
  0x1d   :  { %200 = vmatpush.bf16.msra.mxu1 %v399_v6 }
  0x20   :  { %283 = vmatpush.bf16.msra.mxu2 %v407_v14 }
  0x21   :  { %201 = vmatpush.bf16.msra.mxu1 %v398_v7 }
  0x24   :  { %284 = vmatpush.bf16.msra.mxu2 %v406_v15 }
  0x25   :  { %202 = vmatpush.bf16.msra.mxu1 %v397_v8 }
  0x28   :  { %285 = vmatpush.bf16.msra.mxu2 %v405_v16 }
  0x29   :  { %203 = vmatpush.bf16.msra.mxu1 %v396_v9 }
  0x2c   :  { %286 = vmatpush.bf16.msra.mxu2 %v404_v17 }
  0x2d   :  { %204 = vmatpush.bf16.msra.mxu1 %v395_v10 }
  0x30   :  { %287 = vmatpush.bf16.msra.mxu2 %v403_v24 }
  0x31   :  { %205 = vmatpush.bf16.msra.mxu1 %v394_v11 }
  0x34   :  { %288 = vmatpush.bf16.msra.mxu2 %v402_v25 }
  0x98   :  { %v124_v19 = vpop.f32.mrf.mxu0 }
  0x99   :  { %v125_v20 = vadd.f32 %v417_v18, %v124_v19 }
  0x9b   :  { %v128_v21 = vmax.f32 %v125_v20, 0.0 }
  0x9d   :  { %v129_v22 = vpack.c.bf16 %v128_v21, %v128_v21 }
  0x9f   :  { %206 = vmatmul.bf16.vlgmr.msra.gmra.mxu1 %v129_v22 }
  0xa0   :  { %v126_v23 = vpop.f32.mrf.mxu0 }
 0x11c   :  { %v207_v27 = vpop.f32.mrf.mxu1 }
 0x11d   :  { %v208_v28 = vadd.f32 %v418_v26, %v207_v27 }
 0x11f   :  { %v211_v29 = vmax.f32 %v208_v28, 0.0 }
 0x121   :  { %v212_v30 = vpack.c.bf16 %v211_v29, %v211_v29 }
 0x123   :  { %289 = vmatmul.bf16.vlgmr.msra.gmra.mxu2 %v212_v30 }
 0x124   :  { %v209_v31 = vpop.f32.mrf.mxu1 }
 0x1a6   :  { %v290_v33 = vpop.f32.mrf.mxu2 }
 0x1a7   :  { %v291_v34 = vadd.f32 %v419_v32, %v290_v33 }
 0x1a9   :  { %v294_v35 = vsub.f32 0.0, %v291_v34 }
 0x1ab   :  { %v295_v36 = vmul.f32 1.442695, %v294_v35 }
 0x1ad   :  { %420 = vpow2.f32 %v295_v36 }
 0x1ae   :  { %v292_v37 = vpop.f32.mrf.mxu2 }
 0x1b3   :  { %v421_v38 = vpop.eup %420 }
 0x1b4   :  { %v297_v39 = vadd.f32 1.0, %v421_v38 }
 0x1b6   :  { %422 = vrcp.f32 %v297_v39 }
 0x1bc   :  { %v423_v40 = vpop.eup %422 }
 0x1bd   :  { %299 = vst [vmem:[#allocation10] sm:$0xff] %v423_v40 }
 0x1be   :  { %310 = dma.vmem_to_hbm [thread:$0]  %s306_s24, 128, %s308_s27, [#allocation4]  }
 0x1bf   :  { %550 = dma.done.wait [#allocation4], 128  }
 0x1c0   :  { %551 = vsyncadd [#allocation4], 4294967168 }
 0x1c1   :  { %315 = vsyncpa [#allocation3], 1 }
 0x1c2   :  { %316 = vsyncpa [#allocation6], 1 }
 0x1c3   :  { %317 = vsyncpa [#allocation9], 1 }
 0x1c4   :  { %318 = vsyncpa [#allocation4], 1 }

</bundles_post_ra>
